<compile_context>
chip_gen: v7x
topology: tpu7x:2x2x1
jax: 0.10.0
libtpu: 0.0.40
codegen_flags: <defaults>
</compile_context>

<pallas_src>
import math

import jax
import jax.numpy as jnp
from jax import lax
from jax.experimental import pallas as pl
from jax.experimental.pallas import tpu as pltpu


def _build_pe_reference(max_len: int, d_model: int) -> jnp.ndarray:
    """Pure-JAX PE table matching the PyTorch buffer, shape (max_len, 1, d_model)."""
    position = jnp.arange(0, max_len, dtype=jnp.float32)[:, None]
    div_term = jnp.exp(
        jnp.arange(0, d_model, 2, dtype=jnp.float32) * (-math.log(10000.0) / d_model)
    )
    angles = position * div_term
    pe = jnp.zeros((max_len, d_model), dtype=jnp.float32)
    pe = pe.at[:, 0::2].set(jnp.sin(angles))
    pe = pe.at[:, 1::2].set(jnp.cos(angles))
    return pe[:, None, :]


def _pe_add_kernel(inv_freq_ref, sin_mask_ref, x_ref, o_ref):
    # inv_freq_ref / sin_mask_ref: (1, Lb) per-lane constants (VMEM-resident).
    # x_ref / o_ref: (t, Lb) flattened tiles, or (t, tb, D) 3-D tiles.
    t = x_ref.shape[0]
    # (t, 1) column iota of absolute sequence positions for this row tile.
    pos = (lax.broadcasted_iota(jnp.int32, (t, 1), 0)
           + pl.program_id(0) * t).astype(jnp.float32)
    angle = pos * inv_freq_ref[...]                       # (t,1)*(1,Lb) -> (t,Lb)
    pe = jnp.where(sin_mask_ref[...] > 0.5, jnp.sin(angle), jnp.cos(angle))

    xval = x_ref[...]
    if xval.ndim == 3:
        pe = pe[:, None, :]                               # broadcast over batch sublanes
    o_ref[...] = (xval.astype(jnp.float32) + pe).astype(o_ref.dtype)


def positional_encoding(x: jnp.ndarray, *,
                        target_tile_bytes: int = 4 * 1024 * 1024) -> jnp.ndarray:
    """x: (S, B, D) float. Returns x + pe[:S] broadcast over batch (eval-mode dropout)."""
    S, B, D = x.shape
    itemsize = x.dtype.itemsize
    # Dtype-aware sublane multiple: 8 for f32, 16 for bf16, 32 for int8/fp8.
    sub = max(8, 32 // max(1, itemsize))

    # Host-side per-lane PE constants -- exactly the reference (PyTorch) math.
    div_term = jnp.exp(
        jnp.arange(0, D, 2, dtype=jnp.float32) * (-math.log(10000.0) / D))

    use_3d = (D % 128 == 0) and (B % sub == 0)

    if use_3d:
        # (rows, batch, D) blocks; PE computed on a (rows, D) slab, broadcast over B.
        xv = x
        L = D
        d_idx = jnp.arange(D, dtype=jnp.int32)
        row_bytes = B * D * itemsize
        if row_bytes <= target_tile_bytes:
            tb = B
            tr = max(1, min(S, target_tile_bytes // row_bytes))
            if S // tr < 4 and S >= 4:          # keep >=4 steps for megacore/pipeline
                tr = max(1, S // 4)
        else:                                   # huge B*D: tile the batch axis too
            tr = 1
            tb = min(B, max(sub, ((target_tile_bytes // (D * itemsize)) // sub) * sub))
        grid = (pl.cdiv(S, tr), pl.cdiv(B, tb))
        block = (tr, tb, D)
        tab_block = (1, D)
        x_map = lambda s, b: (s, b, 0)
        c_map = lambda s, b: (0, 0)
        tile_bytes = tr * tb * D * itemsize
    else:
        # Flatten (S, B, D) -> (S, B*D): lane-dense output whenever B*D % 128 == 0.
        bd = B * D
        xv = x.reshape(S, bd)
        L = bd
        d_idx = jnp.arange(bd, dtype=jnp.int32) % D
        row_bytes = bd * itemsize
        if row_bytes <= target_tile_bytes:
            tc = bd
            tr = max(1, min(S, target_tile_bytes // row_bytes))
            if S // tr < 4 and S >= 4 * sub:    # >=4 row tiles when S allows
                tr = (S // 4) // sub * sub
            if tr < S:
                tr = max(sub, (tr // sub) * sub)   # dtype-aware sublane alignment
            tr = min(tr, S)
        else:                                   # huge B*D row: add a lane-tile axis
            tr = min(S, sub)
            tc = min(bd, max(128, ((target_tile_bytes // (tr * itemsize)) // 128) * 128))
        grid = (pl.cdiv(S, tr), pl.cdiv(bd, tc))
        block = (tr, tc)
        tab_block = (1, tc)
        x_map = lambda s, c: (s, c)
        c_map = lambda s, c: (0, c)
        tile_bytes = tr * tc * itemsize

    inv_freq = div_term[d_idx // 2].astype(jnp.float32).reshape(1, L)
    sin_mask = (d_idx % 2 == 0).astype(jnp.float32).reshape(1, L)

    # Double-buffered in + out tiles + lane tables + headroom; cap for v7x (64 MiB phys).
    vmem_limit = int(min(max(4 * tile_bytes + 16 * L * 4 + (2 << 20), 16 << 20), 40 << 20))

    out = pl.pallas_call(
        _pe_add_kernel,
        out_shape=jax.ShapeDtypeStruct(xv.shape, x.dtype),
        grid_spec=pltpu.PrefetchScalarGridSpec(
            num_scalar_prefetch=0,
            grid=grid,
            in_specs=[pl.BlockSpec(tab_block, c_map),
                      pl.BlockSpec(tab_block, c_map),
                      pl.BlockSpec(block, x_map)],
            out_specs=pl.BlockSpec(block, x_map),
        ),
        compiler_params=pltpu.CompilerParams(
            dimension_semantics=("parallel", "parallel"),
            vmem_limit_bytes=vmem_limit,
        ),
    )(inv_freq, sin_mask, xv)
    return out.reshape(S, B, D)


if __name__ == "__main__":
    key = jax.random.PRNGKey(0)
    k1, k2, k3 = jax.random.split(key, 3)

    # 1) Small shapes consistent with the module: seq=8, batch=2, d_model=32.
    d_model, batch, seq_len, max_len = 32, 2, 8, 64
    x = jax.random.normal(k1, (seq_len, batch, d_model), dtype=jnp.float32)
    ref = x + _build_pe_reference(max_len, d_model)[:seq_len]   # eval-mode dropout == identity
    out = positional_encoding(x)
    jax.block_until_ready(out)
    assert out.shape == (seq_len, batch, d_model)
    assert jnp.allclose(out, ref, atol=1e-4, rtol=1e-4), "mismatch vs reference (small)"

    # 2) Multi-tile flattened path (B*D lane-dense, grid > 1).
    S2, B2, D2 = 256, 2, 128
    x_big = jax.random.normal(k2, (S2, B2, D2), dtype=jnp.float32)
    ref_big = x_big + _build_pe_reference(512, D2)[:S2]
    out_big = positional_encoding(x_big)
    jax.block_until_ready(out_big)
    assert jnp.allclose(out_big, ref_big, atol=1e-4, rtol=1e-4), "mismatch vs reference (tiled flat)"

    # 3) 3-D path: D % 128 == 0 and batch sublane-aligned (PE broadcast over B).
    S3, B3, D3 = 96, 8, 128
    x3 = jax.random.normal(k3, (S3, B3, D3), dtype=jnp.float32)
    ref3 = x3 + _build_pe_reference(128, D3)[:S3]
    out3 = positional_encoding(x3)
    jax.block_until_ready(out3)
    assert jnp.allclose(out3, ref3, atol=1e-4, rtol=1e-4), "mismatch vs reference (3-D path)"

    print("KERNEL_OK")
</pallas_src>

<mosaic_0001>
module attributes {stable_mosaic.version = 11 : i64} {
  func.func @_pe_add_kernel(%arg0: i32, %arg1: i32, %arg2: memref<1x64xf32, #tpu.memory_space<vmem>>, %arg3: memref<1x64xf32, #tpu.memory_space<vmem>>, %arg4: memref<8x64xf32, #tpu.memory_space<vmem>>, %arg5: memref<8x64xf32, #tpu.memory_space<vmem>>) attributes {dimension_semantics = [#tpu.dimension_semantics<parallel>, #tpu.dimension_semantics<parallel>], iteration_bounds = array<i64: 1, 1>, scalar_prefetch = 0 : i64, scratch_operands = 0 : i64, tpu.core_type = #tpu.core_type<tc>, window_params = [{transform_indices = @transform_0, window_bounds = array<i64: 1, 64>}, {transform_indices = @transform_1, window_bounds = array<i64: 1, 64>}, {transform_indices = @transform_2, window_bounds = array<i64: 8, 64>}, {transform_indices = @transform_3, window_bounds = array<i64: 8, 64>}]} {
    %0 = tpu.iota {dimensions = array<i32: 0>} : vector<8x1xi32>
    %c8_i32 = arith.constant 8 : i32
    %1 = arith.muli %arg0, %c8_i32 : i32
    %2 = vector.broadcast %1 : i32 to vector<8x1xi32>
    %3 = arith.addi %0, %2 : vector<8x1xi32>
    %4 = arith.sitofp %3 : vector<8x1xi32> to vector<8x1xf32>
    %c0 = arith.constant 0 : index
    %c0_0 = arith.constant 0 : index
    %5 = vector.load %arg2[%c0, %c0_0] : memref<1x64xf32, #tpu.memory_space<vmem>>, vector<1x64xf32>
    %6 = vector.broadcast %4 : vector<8x1xf32> to vector<8x64xf32>
    %7 = vector.broadcast %5 : vector<1x64xf32> to vector<8x64xf32>
    %8 = arith.mulf %6, %7 : vector<8x64xf32>
    %c0_1 = arith.constant 0 : index
    %c0_2 = arith.constant 0 : index
    %9 = vector.load %arg3[%c0_1, %c0_2] : memref<1x64xf32, #tpu.memory_space<vmem>>, vector<1x64xf32>
    %cst = arith.constant 5.000000e-01 : f32
    %10 = vector.broadcast %cst : f32 to vector<1x64xf32>
    %11 = arith.cmpf ogt, %9, %10 : vector<1x64xf32>
    %12 = math.sin %8 : vector<8x64xf32>
    %13 = math.cos %8 : vector<8x64xf32>
    %14 = vector.shape_cast %11 : vector<1x64xi1> to vector<1x64xi1>
    %15 = vector.broadcast %14 : vector<1x64xi1> to vector<8x64xi1>
    %16 = arith.select %15, %12, %13 : vector<8x64xi1>, vector<8x64xf32>
    %c0_3 = arith.constant 0 : index
    %c0_4 = arith.constant 0 : index
    %17 = vector.load %arg4[%c0_3, %c0_4] : memref<8x64xf32, #tpu.memory_space<vmem>>, vector<8x64xf32>
    %18 = arith.addf %17, %16 : vector<8x64xf32>
    %c0_5 = arith.constant 0 : index
    %c0_6 = arith.constant 0 : index
    %19 = vector.load %arg5[%c0_5, %c0_6] : memref<8x64xf32, #tpu.memory_space<vmem>>, vector<8x64xf32>
    tpu.vector_store %arg5[%c0_5, %c0_6], %18 {strides = array<i32>} : memref<8x64xf32, #tpu.memory_space<vmem>>, vector<8x64xf32>,
    return
  }
  func.func @transform_0(%arg0: i32, %arg1: i32) -> (i32, i32) {
    %c0_i32 = arith.constant 0 : i32
    %c0_i32_0 = arith.constant 0 : i32
    return %c0_i32, %arg1 : i32, i32
  }
  func.func @transform_1(%arg0: i32, %arg1: i32) -> (i32, i32) {
    %c0_i32 = arith.constant 0 : i32
    %c0_i32_0 = arith.constant 0 : i32
    return %c0_i32, %arg1 : i32, i32
  }
  func.func @transform_2(%arg0: i32, %arg1: i32) -> (i32, i32) {
    %c0_i32 = arith.constant 0 : i32
    return %arg0, %arg1 : i32, i32
  }
  func.func @transform_3(%arg0: i32, %arg1: i32) -> (i32, i32) {
    %c0_i32 = arith.constant 0 : i32
    return %arg0, %arg1 : i32, i32
  }
}

</mosaic_0001>

<bundles_post_ra>
// kernel: tpu_custom_call.1
= control target key start
LH: loop header
LB: loop body
LE: loop exit
PB: predicated region body
PF: predicated region fallthrough
CT: control target
= control target key end

     0   :  { %8 = vsyncpa [#allocation3], 0  ;;  %s482_s0 = inlined_call_operand.hbm [shape: f32[1,64], index: 0, kind: input, shape index: {}]   ;;  %s483_s1 = inlined_call_operand.vmem [shape: f32[1,64], index: 1, kind: input, shape index: {}]   ;;  %s484_s2 = inlined_call_operand.hbm [shape: f32[8,64], index: 2, kind: input, shape index: {}]   ;;  %s485_s3 = inlined_call_operand.hbm [shape: f32[8,64], index: 3, kind: output, shape index: {}]  }
   0x1   :  { %9 = vsyncpa [#allocation6], 0 }
   0x2   :  { %10 = vsyncpa [#allocation4], 0  ;;  %s388_s12 = smov [#allocation2]   ;;  %s389_s14 = smov [#allocation5]  }
   0x3   :  { %s17_s13 = sshll.u32 %s388_s12, 4  ;;  %s29_s15 = sshll.u32 %s389_s14, 4  ;;  %s18_s13 = int_to_ptr.vmem [resolvable:$true] %s17_s13  ;;  %s30_s15 = int_to_ptr.vmem [resolvable:$true] %s29_s15 }
   0x4   :  { %s316_s18 = scalar_lea.hbm %s482_s0, 16 }
   0x5   :  { %p317_p0 = scmp.ne.s32.totalorder %s482_s0, %s316_s18  ;;  %p320_p1 = scmp.lt.u32.totalorder %s316_s18, %s482_s0 }
   0x7   :  { %p322_p2 = pnand %p320_p1, %p317_p0 }
   0x9   :  { %325 = shalt.err (!%p322_p2)
}
   0xa   :  { %s326_s23 = scalar_lea.vmem %s18_s13, 16  ;;  %s330_s24 = scalar_lea.vmem %s18_s13, 32 }
   0xb   :  { %p327_p3 = scmp.ne.s32.totalorder %s18_s13, %s326_s23  ;;  %p331_p4 = scmp.lt.s32.totalorder %s18_s13, %s18_s13 }
   0xc   :  { %p332_p5 = scmp.lt.s32.totalorder %s330_s24, %s326_s23 }
   0xe   :  { %p333_p6 = por %p332_p5, %p331_p4 }
  0x10   :  { %p334_p7 = pnand %p333_p6, %p327_p3 }
  0x12   :  { %337 = shalt.err (!%p334_p7)
}
  0x13   :  { %20 = dma.hbm_to_vmem [thread:$0]  %s482_s0, 16, %s18_s13, [#allocation3]  }
  0x14   :  { %s338_s29 = scalar_lea.hbm %s484_s2, 128 }
  0x15   :  { %p339_p8 = scmp.ne.s32.totalorder %s484_s2, %s338_s29  ;;  %p342_p9 = scmp.lt.u32.totalorder %s338_s29, %s484_s2 }
  0x17   :  { %p344_p10 = pnand %p342_p9, %p339_p8 }
  0x19   :  { %347 = shalt.err (!%p344_p10)
}
  0x1a   :  { %s348_s7 = scalar_lea.vmem %s30_s15, 128  ;;  %p353_p12 = scmp.lt.s32.totalorder %s30_s15, %s30_s15 }
  0x1b   :  { %p349_p11 = scmp.ne.s32.totalorder %s30_s15, %s348_s7  ;;  %p354_p13 = scmp.lt.s32.totalorder %s348_s7, %s348_s7 }
  0x1d   :  { %p355_p0 = por %p354_p13, %p353_p12 }
  0x1f   :  { %p356_p1 = pnand %p355_p0, %p349_p11 }
  0x21   :  { %359 = shalt.err (!%p356_p1)
}
  0x22   :  { %32 = dma.hbm_to_vmem [thread:$0]  %s484_s2, 128, %s30_s15, [#allocation6]  }
  0x23   :  { %382 = dma.done.wait [#allocation3], 16  }
  0x24   :  { %383 = vsyncadd [#allocation3], 4294967280 }
  0x25   :  { %384 = dma.done.wait [#allocation6], 128  }
  0x26   :  { %385 = vsyncadd [#allocation6], 4294967168  ;;  %v39_v0 = vlaneseq  ;;  %v289_v3 = vld [vmem:[#allocation2] ss:$0 sm:$0xff]  ;;  %v390_v16 = vmov 683565275  }
  0x27   :  { %v391_v18 = vmov 2475754826   ;;  %v392_v20 = vmov 2131351028   ;;  %v393_v22 = vmov 2102212464  }
  0x28   :  { %v442_v1 = vshrl.u32 %v39_v0, 7  ;;  %v394_v24 = vmov 920167782   ;;  %v395_v31 = vmov 1326507024  }
  0x2a   :  { %v44_v2 = vcvt.s32.f32 %v442_v1 }
  0x2c   :  { %v445_v4 = vmul.f32 %v289_v3, %v44_v2 }
  0x2e   :  { %v58_v5 = vand.u32 2139095040, %v445_v4  ;;  %v55_v7 = vand.u32 2147483647, %v445_v4  ;;  %vm57_vm7 = vcmp.lt.s32.totalorder %v445_v4, 0 }
  0x30   :  { %v59_v6 = vshrl.u32 %v58_v5, 23  ;;  %v62_v10 = vand.u32 8388607, %v55_v7  ;;  %vm56_vm8 = vcmp.le.f32.partialorder %v55_v7, 0.7853982 }
  0x32   :  { %v290_v8 = vadd.s32 4294967169, %v59_v6  ;;  %v63_v13 = vor.u32 8388608, %v62_v10 }
  0x34   :  { %v65_v9 = vadd.s32 1, %v290_v8  ;;  %v103_v33 = vshll.u32 %v63_v13, 8 }
  0x36   :  { %vm66_vm0 = vcmp.gt.s32.totalorder %v65_v9, 0 }
  0x37   :  { %v67_v11 = vsel %vm66_vm0, %v65_v9, 0  ;;  %vm147_vm0 = vweird.f32 %v445_v4 }
  0x38   :  { %v69_v12 = vand.u32 31, %v67_v11  ;;  %v68_v14 = vshrl.u32 %v67_v11, 5 }
  0x3a   :  { %v70_v15 = vsub.s32 32, %v69_v12  ;;  %v72_v17 = vshll.u32 %v390_v16, %v69_v12  ;;  %v75_v19 = vshll.u32 %v391_v18, %v69_v12  ;;  %v78_v21 = vshll.u32 %v392_v20, %v69_v12 }
  0x3b   :  { %v81_v23 = vshll.u32 %v393_v22, %v69_v12  ;;  %v84_v25 = vshll.u32 %v394_v24, %v69_v12  ;;  %vm87_vm1 = vcmp.lt.s32.totalorder %v68_v14, 1  ;;  %vm90_vm2 = vcmp.lt.s32.totalorder %v68_v14, 4 }
  0x3c   :  { %v71_v26 = vshrl.u32 %v390_v16, %v70_v15  ;;  %v73_v27 = vshrl.u32 %v391_v18, %v70_v15  ;;  %v76_v28 = vshrl.u32 %v392_v20, %v70_v15  ;;  %v79_v29 = vshrl.u32 %v393_v22, %v70_v15 }
  0x3d   :  { %v82_v30 = vshrl.u32 %v394_v24, %v70_v15  ;;  %v85_v32 = vshrl.u32 %v395_v31, %v70_v15  ;;  %vm88_vm3 = vcmp.lt.s32.totalorder %v68_v14, 2  ;;  %vm89_vm4 = vcmp.lt.s32.totalorder %v68_v14, 3 }
  0x3e   :  { %v74_v34 = vor.u32 %v73_v27, %v72_v17  ;;  %v77_v35 = vor.u32 %v76_v28, %v75_v19  ;;  %v80_v36 = vor.u32 %v79_v29, %v78_v21  ;;  %v265_v29 = vsub.s32 0, %v442_v1 }
  0x3f   :  { %v83_v37 = vor.u32 %v82_v30, %v81_v23  ;;  %v86_v38 = vor.u32 %v85_v32, %v84_v25  ;;  %v53_v25 = vld [vmem:[%s483_s1] sm:$0x1]  ;;  %v396_v30 = vmov 0   ;;  %s397_s1 = smov [#allocation7]  }
  0x40   :  { %v91_v39 = vsel %vm87_vm1, %v71_v26, %v74_v34  ;;  %v92_v40 = vsel %vm90_vm2, %v80_v36, 2102212464  ;;  %v95_v41 = vsel %vm87_vm1, %v74_v34, %v77_v35  ;;  %v99_v42 = vsel %vm87_vm1, %v77_v35, %v80_v36  ;;  %s279_s10 = sshll.u32 %s397_s1, 4  ;;  %s280_s10 = int_to_ptr.vmem [resolvable:$true] %s279_s10 }
  0x41   :  { %v93_v43 = vsel %vm89_vm4, %v77_v35, %v92_v40  ;;  %v96_v44 = vsel %vm90_vm2, %v83_v37, 920167782  ;;  %v100_v45 = vsel %vm90_vm2, %v86_v38, 1326507024  ;;  %vm54_vm9 = vcmp.gt.f32.partialorder %v53_v25, 0.5  ;;  %s360_s11 = scalar_lea.vmem %s280_s10, 128  ;;  %p365_p3 = scmp.lt.s32.totalorder %s280_s10, %s280_s10 }
  0x42   :  { %v97_v46 = vsel %vm89_vm4, %v80_v36, %v96_v44  ;;  %v101_v47 = vsel %vm89_vm4, %v83_v37, %v100_v45  ;;  %v94_v48 = vsel %vm88_vm3, %v91_v39, %v93_v43  ;;  %v262_v7 = vsel %vm54_vm9, 1, %v396_v30  ;;  %p361_p2 = scmp.ne.s32.totalorder %s280_s10, %s360_s11  ;;  %p366_p4 = scmp.lt.s32.totalorder %s360_s11, %s360_s11 }
  0x43   :  { %v98_v49 = vsel %vm88_vm3, %v95_v41, %v97_v46  ;;  %v102_v50 = vsel %vm88_vm3, %v99_v42, %v101_v47  ;;  %v110_v55 = vmul.u32 %v103_v33, %v94_v48  ;;  %v266_v32 = vrot.slane %v262_v7, %v265_v29  ;;  %v269_v41 = vld [vmem:[#allocation5] sm:$0xff] }
  0x44   :  { %v451_v51 = vmul.u32.u64.low %v103_v33, %v102_v50  ;;  %v452_v52 = vmul.u32.u64.high %v103_v33, %v102_v50, %v451_v51  ;;  %v454_v53 = vmul.u32.u64.low %v103_v33, %v98_v49  ;;  %v455_v54 = vmul.u32.u64.high %v103_v33, %v98_v49, %v454_v53  ;;  %p367_p5 = por %p366_p4, %p365_p3 }
  0x45   :  { %vm267_vm1 = vcmp.eq.s32.totalorder %v266_v32, 1  ;;  %vm271_vm2 = vcmask 523264  }
  0x46   :  { %vm112_vm5 = vc.u32 %v452_v52, %v454_v53  ;;  %v113_v56 = vadd.s32 1, %v455_v54  ;;  %v111_v5 = vadd.s32 %v454_v53, %v452_v52  ;;  %p368_p6 = pnand %p367_p5, %p361_p2 }
  0x48   :  { %v114_v57 = vsel %vm112_vm5, %v113_v56, %v455_v54 }
  0x49   :  { %v115_v58 = vadd.s32 %v114_v57, %v110_v55 }
  0x4b   :  { %v116_v59 = vadd.s32 536870912, %v115_v58 }
  0x4d   :  { %v117_v60 = vshrl.u32 %v116_v59, 30 }
  0x4f   :  { %v118_v61 = vshll.u32 %v117_v60, 30  ;;  %v141_v18 = vsub.s32 4, %v117_v60 }
  0x51   :  { %v119_v62 = vsub.s32 %v115_v58, %v118_v61  ;;  %v142_v21 = vsel %vm57_vm7, %v141_v18, %v117_v60 }
  0x52   :  { %v144_v24 = vsel %vm56_vm8, 0, %v142_v21 }
  0x53   :  { %v121_v63 = vsub.s32 0, %v119_v62  ;;  %v148_v26 = vadd.s32 3, %v144_v24  ;;  %v252_v28 = vand.u32 3, %v144_v24 }
  0x55   :  { %v291_v0 = vmin.u32 %v121_v63, %v119_v62  ;;  %v149_v27 = vand.u32 3, %v148_v26  ;;  %vm257_vm11 = vcmp.eq.s32.totalorder %v252_v28, 2  ;;  %vm254_vm13 = vcmp.eq.s32.totalorder %v252_v28, 0 }
  0x56   :  { %vm253_vm15 = vcmp.lt.s32.totalorder %v252_v28, 2 }
  0x57   :  { %v123_v2 = vclz %v291_v0  ;;  %vm154_vm10 = vcmp.eq.s32.totalorder %v149_v27, 2  ;;  %vm151_vm12 = vcmp.eq.s32.totalorder %v149_v27, 0  ;;  %vm150_vm14 = vcmp.lt.s32.totalorder %v149_v27, 2 }
  0x59   :  { %v292_v3 = vadd.s32 4294967294, %v123_v2 }
  0x5b   :  { %vm293_vm6 = vcmp.lt.s32.totalorder %v292_v3, 0 }
  0x5c   :  { %v126_v6 = vsel %vm293_vm6, 0, %v292_v3 }
  0x5d   :  { %v127_v8 = vsub.s32 32, %v126_v6  ;;  %v128_v9 = vshll.u32 %v119_v62, %v126_v6  ;;  %v131_v10 = vsub.s32 4294967266, %v126_v6 }
  0x5f   :  { %v129_v11 = vshrl.u32 %v111_v5, %v127_v8  ;;  %v132_v12 = vadd.s32 127, %v131_v10 }
  0x61   :  { %v130_v13 = vor.u32 %v129_v11, %v128_v9  ;;  %v133_v14 = vshll.u32 %v132_v12, 23 }
  0x63   :  { %v134_v15 = vor.u32 4788187, %v133_v14  ;;  %v137_v16 = vcvt.s32.f32 %v130_v13 }
  0x65   :  { %v135_v17 = vand.u32 2147483647, %v134_v15 }
  0x67   :  { %v138_v19 = vmul.f32 %v137_v16, %v135_v17 }
  0x69   :  { %v139_v20 = vxor.u32 2147483648, %v138_v19 }
  0x6b   :  { %v140_v22 = vsel %vm57_vm7, %v139_v20, %v138_v19 }
  0x6c   :  { %v143_v23 = vsel %vm56_vm8, %v445_v4, %v140_v22 }
  0x6d   :  { %312 = vcosq.f32 %v143_v23 }
  0x6e   :  { %314 = vsinq.f32 %v143_v23 }
  0x77   :  { %v313_v31 = vpop.eup %312 }
  0x78   :  { %v315_v33 = vpop.eup %314  ;;  %v155_v34 = vxor.u32 2147483648, %v313_v31 }
  0x79   :  { %v152_v35 = vxor.u32 2147483648, %v315_v33 }
  0x7a   :  { %v156_v36 = vsel %vm154_vm10, %v155_v34, %v315_v33  ;;  %v259_v37 = vsel %vm257_vm11, %v155_v34, %v315_v33 }
  0x7b   :  { %v153_v38 = vsel %vm151_vm12, %v313_v31, %v152_v35  ;;  %v256_v39 = vsel %vm254_vm13, %v313_v31, %v152_v35 }
  0x7c   :  { %v157_v1 = vsel %vm150_vm14, %v153_v38, %v156_v36  ;;  %v260_v40 = vsel %vm253_vm15, %v256_v39, %v259_v37 }
  0x7d   :  { %v158_v42 = vsel %vm147_vm0, nan, %v157_v1  ;;  %v261_v43 = vsel %vm147_vm0, nan, %v260_v40 }
  0x7e   :  { %v268_v44 = vsel %vm267_vm1, %v158_v42, %v261_v43 }
  0x7f   :  { %v270_v45 = vadd.f32 %v269_v41, %v268_v44 }
  0x81   :  { %272 = vst.msk [vmem:[#allocation7] sm:$0xff] %vm271_vm2, %v270_v45 }
  0x82   :  { %371 = shalt.err (!%p368_p6)
}
  0x83   :  { %s372_s14 = scalar_lea.hbm %s485_s3, 128 }
  0x84   :  { %p373_p7 = scmp.ne.s32.totalorder %s485_s3, %s372_s14  ;;  %p376_p8 = scmp.lt.u32.totalorder %s372_s14, %s485_s3 }
  0x86   :  { %p378_p9 = pnand %p376_p8, %p373_p7 }
  0x88   :  { %381 = shalt.err (!%p378_p9)
}
  0x89   :  { %282 = dma.vmem_to_hbm [thread:$0]  %s280_s10, 128, %s485_s3, [#allocation4]  }
  0x8a   :  { %386 = dma.done.wait [#allocation4], 128  }
  0x8b   :  { %387 = vsyncadd [#allocation4], 4294967168 }
  0x8c   :  { %286 = vsyncpa [#allocation3], 1 }
  0x8d   :  { %287 = vsyncpa [#allocation6], 1 }
  0x8e   :  { %288 = vsyncpa [#allocation4], 1 }

</bundles_post_ra>
